<compile_context>
chip_gen: v7x
topology: tpu7x:2x2x1
jax: 0.10.0
libtpu: 0.0.40
codegen_flags: <defaults>
</compile_context>

<pallas_src>
import functools

import jax
import jax.numpy as jnp
from jax.experimental import pallas as pl
from jax.experimental.pallas import tpu as pltpu


HID1 = 128
HID2 = 64
OUT_PAD = 128          # lane-dense padded output width
MAX_TILE_B = 1024      # batch tile (rows per grid step); ~1 MiB/tile, safe on v7x


def _actor_kernel(x_ref, w1_ref, b1_ref, w2_ref, b2_ref, w3_ref, b3_ref,
                  o_ref, *, max_action):
    # fc1 + relu  (bf16 operands, f32 accumulate, f32 activation math)
    h1 = jnp.dot(x_ref[...], w1_ref[...], preferred_element_type=jnp.float32)
    h1 = jnp.maximum(h1 + b1_ref[...], 0.0)
    # fc2 + relu
    h2 = jnp.dot(h1.astype(w2_ref.dtype), w2_ref[...],
                 preferred_element_type=jnp.float32)
    h2 = jnp.maximum(h2 + b2_ref[...], 0.0)
    # fc_mu (padded to 128 lanes) + tanh, scaled by max_action
    mu = jnp.dot(h2.astype(w3_ref.dtype), w3_ref[...],
                 preferred_element_type=jnp.float32)
    mu = max_action * jnp.tanh(mu + b3_ref[...])
    o_ref[...] = mu.astype(o_ref.dtype)


def prepare_actor_params(params, compute_dtype=jnp.bfloat16):
    """One-time prep: transpose to (in, out), pad mu layer to 128 lane-dense
    output features, cast matmul operands to compute_dtype. Call once, outside
    the hot RL loop."""
    action_dim = params["w_mu"].shape[0]

    w1 = params["w1"].T.astype(compute_dtype)            # (state_dim, 128)
    b1 = params["b1"][None, :].astype(jnp.float32)       # (1, 128)
    w2 = params["w2"].T.astype(compute_dtype)            # (128, 64)
    b2 = params["b2"][None, :].astype(jnp.float32)       # (1, 64)

    w3 = params["w_mu"].T.astype(compute_dtype)          # (64, action_dim)
    b3 = params["b_mu"][None, :].astype(jnp.float32)     # (1, action_dim)
    # zero-pad output features to 128 so the kernel's stores are lane-dense
    w3 = jnp.pad(w3, ((0, 0), (0, OUT_PAD - action_dim)))
    b3 = jnp.pad(b3, ((0, 0), (0, OUT_PAD - action_dim)))

    return {
        "w1": w1, "b1": b1, "w2": w2, "b2": b2, "w3": w3, "b3": b3,
        "action_dim": action_dim,
        "compute_dtype": compute_dtype,
    }


def _round_up(x, m):
    return ((x + m - 1) // m) * m


def actor_forward(state, prepped, max_action):
    """state: (B, state_dim) float32. prepped: output of prepare_actor_params."""
    B, state_dim = state.shape
    action_dim = prepped["action_dim"]
    compute_dtype = prepped["compute_dtype"]

    # Tile / pad the batch: tile is a multiple of 8 sublanes; pad B up to a
    # whole number of tiles so every block is full (padding rows are zeros).
    tb = MAX_TILE_B if B >= MAX_TILE_B else _round_up(B, 8)
    b_pad = _round_up(B, tb)
    if b_pad != B:
        state = jnp.pad(state, ((0, b_pad - B), (0, 0)))
    state = state.astype(compute_dtype)

    grid = (pl.cdiv(b_pad, tb),)

    kernel = functools.partial(_actor_kernel, max_action=float(max_action))

    flops = 2 * b_pad * (state_dim * HID1 + HID1 * HID2 + HID2 * OUT_PAD)
    bytes_accessed = (
        b_pad * state_dim * state.dtype.itemsize          # state in
        + b_pad * OUT_PAD * 4                             # padded f32 out
        + (state_dim * HID1 + HID1 * HID2 + HID2 * OUT_PAD) * 2
        + (HID1 + HID2 + OUT_PAD) * 4                     # weights + biases
    )

    out_padded = pl.pallas_call(
        kernel,
        out_shape=jax.ShapeDtypeStruct((b_pad, OUT_PAD), jnp.float32),
        grid=grid,
        in_specs=[
            pl.BlockSpec((tb, state_dim), lambda i: (i, 0)),     # streamed
            pl.BlockSpec((state_dim, HID1), lambda i: (0, 0)),   # resident
            pl.BlockSpec((1, HID1), lambda i: (0, 0)),
            pl.BlockSpec((HID1, HID2), lambda i: (0, 0)),
            pl.BlockSpec((1, HID2), lambda i: (0, 0)),
            pl.BlockSpec((HID2, OUT_PAD), lambda i: (0, 0)),
            pl.BlockSpec((1, OUT_PAD), lambda i: (0, 0)),
        ],
        out_specs=pl.BlockSpec((tb, OUT_PAD), lambda i: (i, 0)),
        compiler_params=pltpu.CompilerParams(
            dimension_semantics=("parallel",)),
        cost_estimate=pl.CostEstimate(
            flops=flops,
            transcendentals=b_pad * OUT_PAD,
            bytes_accessed=bytes_accessed),
    )(state, prepped["w1"], prepped["b1"], prepped["w2"], prepped["b2"],
      prepped["w3"], prepped["b3"])

    # Strip batch padding and the lane padding of the output head.
    return out_padded[:B, :action_dim]


def init_actor_params(key, state_dim, action_dim):
    """Deterministic init mimicking PyTorch's default Linear init
    (uniform(-1/sqrt(fan_in), 1/sqrt(fan_in)))."""
    ks = jax.random.split(key, 6)

    def lin(kw, kb, fan_in, fan_out):
        bound = 1.0 / jnp.sqrt(fan_in)
        w = jax.random.uniform(kw, (fan_out, fan_in), jnp.float32, -bound, bound)
        b = jax.random.uniform(kb, (fan_out,), jnp.float32, -bound, bound)
        return w, b

    w1, b1 = lin(ks[0], ks[1], state_dim, HID1)
    w2, b2 = lin(ks[2], ks[3], HID1, HID2)
    w_mu, b_mu = lin(ks[4], ks[5], HID2, action_dim)
    return {"w1": w1, "b1": b1, "w2": w2, "b2": b2, "w_mu": w_mu, "b_mu": b_mu}


def actor_reference_f32(state, params, max_action):
    """Pure-f32 reference of the PyTorch forward."""
    a = jax.nn.relu(state @ params["w1"].T + params["b1"])
    a = jax.nn.relu(a @ params["w2"].T + params["b2"])
    return max_action * jnp.tanh(a @ params["w_mu"].T + params["b_mu"])


def actor_reference_bf16(state, params, max_action):
    """Reference matching the kernel's bf16-operand / f32-accumulate scheme."""
    cd = jnp.bfloat16

    def lin(x, w, b):
        return jnp.dot(x.astype(cd), w.T.astype(cd),
                       preferred_element_type=jnp.float32) + b

    a = jax.nn.relu(lin(state, params["w1"], params["b1"]))
    a = jax.nn.relu(lin(a, params["w2"], params["b2"]))
    return max_action * jnp.tanh(lin(a, params["w_mu"], params["b_mu"]))


if __name__ == "__main__":
    key = jax.random.PRNGKey(0)
    k_state, k_params = jax.random.split(key)

    batch = 2
    state_dim = 16
    action_dim = 4
    max_action = 2.0

    state = jax.random.normal(k_state, (batch, state_dim), jnp.float32)
    params = init_actor_params(k_params, state_dim, action_dim)

    # One-time param prep (hoisted out of the hot path).
    prepped = prepare_actor_params(params)

    mu = actor_forward(state, prepped, max_action)
    jax.block_until_ready(mu)
    assert mu.shape == (batch, action_dim)

    # Strict check vs a reference that uses the same bf16-operand scheme.
    mu_ref_bf16 = actor_reference_bf16(state, params, max_action)
    assert jnp.allclose(mu, mu_ref_bf16, atol=1e-3, rtol=1e-3), \
        "mismatch vs bf16-matched reference"

    # Loose sanity check vs the exact f32 PyTorch-semantics reference.
    mu_ref_f32 = actor_reference_f32(state, params, max_action)
    assert jnp.allclose(mu, mu_ref_f32, atol=5e-2, rtol=5e-2), \
        "mismatch vs f32 reference"

    print("KERNEL_OK")
</pallas_src>

<mosaic_0001>
module attributes {stable_mosaic.version = 11 : i64} {
  func.func @_actor_kernel(%arg0: i32, %arg1: memref<8x16xbf16, #tpu.memory_space<vmem>>, %arg2: memref<16x128xbf16, #tpu.memory_space<vmem>>, %arg3: memref<1x128xf32, #tpu.memory_space<vmem>>, %arg4: memref<128x64xbf16, #tpu.memory_space<vmem>>, %arg5: memref<1x64xf32, #tpu.memory_space<vmem>>, %arg6: memref<64x128xbf16, #tpu.memory_space<vmem>>, %arg7: memref<1x128xf32, #tpu.memory_space<vmem>>, %arg8: memref<8x128xf32, #tpu.memory_space<vmem>>) attributes {dimension_semantics = [#tpu.dimension_semantics<parallel>], iteration_bounds = array<i64: 1>, scalar_prefetch = 0 : i64, scratch_operands = 0 : i64, tpu.core_type = #tpu.core_type<tc>, window_params = [{transform_indices = @transform_0, window_bounds = array<i64: 8, 16>}, {pipeline_mode = #tpu.pipeline_mode<synchronous>, transform_indices = @transform_1, window_bounds = array<i64: 16, 128>}, {pipeline_mode = #tpu.pipeline_mode<synchronous>, transform_indices = @transform_2, window_bounds = array<i64: 1, 128>}, {pipeline_mode = #tpu.pipeline_mode<synchronous>, transform_indices = @transform_3, window_bounds = array<i64: 128, 64>}, {pipeline_mode = #tpu.pipeline_mode<synchronous>, transform_indices = @transform_4, window_bounds = array<i64: 1, 64>}, {pipeline_mode = #tpu.pipeline_mode<synchronous>, transform_indices = @transform_5, window_bounds = array<i64: 64, 128>}, {pipeline_mode = #tpu.pipeline_mode<synchronous>, transform_indices = @transform_6, window_bounds = array<i64: 1, 128>}, {transform_indices = @transform_7, window_bounds = array<i64: 8, 128>}]} {
    %c0 = arith.constant 0 : index
    %c0_0 = arith.constant 0 : index
    %0 = vector.load %arg1[%c0, %c0_0] : memref<8x16xbf16, #tpu.memory_space<vmem>>, vector<8x16xbf16>
    %c0_1 = arith.constant 0 : index
    %c0_2 = arith.constant 0 : index
    %1 = vector.load %arg2[%c0_1, %c0_2] : memref<16x128xbf16, #tpu.memory_space<vmem>>, vector<16x128xbf16>
    %cst = arith.constant dense<0.000000e+00> : vector<8x128xf32>
    %2 = tpu.matmul %0, %1, %cst {dimension_numbers = #tpu.dot_dimension_numbers<[1], [0], [0], [1], [0, 0, 1, 1], [], []>} : vector<8x16xbf16>, vector<16x128xbf16>, vector<8x128xf32> -> vector<8x128xf32>
    %c0_3 = arith.constant 0 : index
    %c0_4 = arith.constant 0 : index
    %3 = vector.load %arg3[%c0_3, %c0_4] : memref<1x128xf32, #tpu.memory_space<vmem>>, vector<1x128xf32>
    %4 = vector.broadcast %3 : vector<1x128xf32> to vector<8x128xf32>
    %5 = arith.addf %2, %4 : vector<8x128xf32>
    %cst_5 = arith.constant 0.000000e+00 : f32
    %6 = vector.broadcast %cst_5 : f32 to vector<8x128xf32>
    %7 = arith.maximumf %5, %6 : vector<8x128xf32>
    %8 = arith.truncf %7 : vector<8x128xf32> to vector<8x128xbf16>
    %c0_6 = arith.constant 0 : index
    %c0_7 = arith.constant 0 : index
    %9 = vector.load %arg4[%c0_6, %c0_7] : memref<128x64xbf16, #tpu.memory_space<vmem>>, vector<128x64xbf16>
    %cst_8 = arith.constant dense<0.000000e+00> : vector<8x64xf32>
    %10 = tpu.matmul %8, %9, %cst_8 {dimension_numbers = #tpu.dot_dimension_numbers<[1], [0], [0], [1], [0, 0, 1, 1], [], []>} : vector<8x128xbf16>, vector<128x64xbf16>, vector<8x64xf32> -> vector<8x64xf32>
    %c0_9 = arith.constant 0 : index
    %c0_10 = arith.constant 0 : index
    %11 = vector.load %arg5[%c0_9, %c0_10] : memref<1x64xf32, #tpu.memory_space<vmem>>, vector<1x64xf32>
    %12 = vector.broadcast %11 : vector<1x64xf32> to vector<8x64xf32>
    %13 = arith.addf %10, %12 : vector<8x64xf32>
    %cst_11 = arith.constant 0.000000e+00 : f32
    %14 = vector.broadcast %cst_11 : f32 to vector<8x64xf32>
    %15 = arith.maximumf %13, %14 : vector<8x64xf32>
    %16 = arith.truncf %15 : vector<8x64xf32> to vector<8x64xbf16>
    %c0_12 = arith.constant 0 : index
    %c0_13 = arith.constant 0 : index
    %17 = vector.load %arg6[%c0_12, %c0_13] : memref<64x128xbf16, #tpu.memory_space<vmem>>, vector<64x128xbf16>
    %cst_14 = arith.constant dense<0.000000e+00> : vector<8x128xf32>
    %18 = tpu.matmul %16, %17, %cst_14 {dimension_numbers = #tpu.dot_dimension_numbers<[1], [0], [0], [1], [0, 0, 1, 1], [], []>} : vector<8x64xbf16>, vector<64x128xbf16>, vector<8x128xf32> -> vector<8x128xf32>
    %c0_15 = arith.constant 0 : index
    %c0_16 = arith.constant 0 : index
    %19 = vector.load %arg7[%c0_15, %c0_16] : memref<1x128xf32, #tpu.memory_space<vmem>>, vector<1x128xf32>
    %20 = vector.broadcast %19 : vector<1x128xf32> to vector<8x128xf32>
    %21 = arith.addf %18, %20 : vector<8x128xf32>
    %22 = math.tanh %21 : vector<8x128xf32>
    %cst_17 = arith.constant 2.000000e+00 : f32
    %23 = vector.broadcast %cst_17 : f32 to vector<8x128xf32>
    %24 = arith.mulf %23, %22 : vector<8x128xf32>
    %c0_18 = arith.constant 0 : index
    %c0_19 = arith.constant 0 : index
    %25 = vector.load %arg8[%c0_18, %c0_19] : memref<8x128xf32, #tpu.memory_space<vmem>>, vector<8x128xf32>
    tpu.vector_store %arg8[%c0_18, %c0_19], %24 {strides = array<i32>} : memref<8x128xf32, #tpu.memory_space<vmem>>, vector<8x128xf32>,
    return
  }
  func.func @transform_0(%arg0: i32) -> (i32, i32) {
    %c0_i32 = arith.constant 0 : i32
    %c0_i32_0 = arith.constant 0 : i32
    return %arg0, %c0_i32 : i32, i32
  }
  func.func @transform_1(%arg0: i32) -> (i32, i32) {
    %c0_i32 = arith.constant 0 : i32
    %c0_i32_0 = arith.constant 0 : i32
    %c0_i32_1 = arith.constant 0 : i32
    return %c0_i32, %c0_i32_0 : i32, i32
  }
  func.func @transform_2(%arg0: i32) -> (i32, i32) {
    %c0_i32 = arith.constant 0 : i32
    %c0_i32_0 = arith.constant 0 : i32
    %c0_i32_1 = arith.constant 0 : i32
    return %c0_i32, %c0_i32_0 : i32, i32
  }
  func.func @transform_3(%arg0: i32) -> (i32, i32) {
    %c0_i32 = arith.constant 0 : i32
    %c0_i32_0 = arith.constant 0 : i32
    %c0_i32_1 = arith.constant 0 : i32
    return %c0_i32, %c0_i32_0 : i32, i32
  }
  func.func @transform_4(%arg0: i32) -> (i32, i32) {
    %c0_i32 = arith.constant 0 : i32
    %c0_i32_0 = arith.constant 0 : i32
    %c0_i32_1 = arith.constant 0 : i32
    return %c0_i32, %c0_i32_0 : i32, i32
  }
  func.func @transform_5(%arg0: i32) -> (i32, i32) {
    %c0_i32 = arith.constant 0 : i32
    %c0_i32_0 = arith.constant 0 : i32
    %c0_i32_1 = arith.constant 0 : i32
    return %c0_i32, %c0_i32_0 : i32, i32
  }
  func.func @transform_6(%arg0: i32) -> (i32, i32) {
    %c0_i32 = arith.constant 0 : i32
    %c0_i32_0 = arith.constant 0 : i32
    %c0_i32_1 = arith.constant 0 : i32
    return %c0_i32, %c0_i32_0 : i32, i32
  }
  func.func @transform_7(%arg0: i32) -> (i32, i32) {
    %c0_i32 = arith.constant 0 : i32
    %c0_i32_0 = arith.constant 0 : i32
    return %arg0, %c0_i32 : i32, i32
  }
}

</mosaic_0001>

<bundles_post_ra>
// kernel: tpu_custom_call.1
= control target key start
LH: loop header
LB: loop body
LE: loop exit
PB: predicated region body
PF: predicated region fallthrough
CT: control target
= control target key end

     0   :  { %v417_v1 = vmov 0.0   ;;  %vm418_vm0 = vmmov 0   ;;  %vm44_vm1 = vcmask 130048   ;;  %s523_s0 = inlined_call_operand.vmem [shape: bf16[8,16], index: 0, kind: input, shape index: {}]   ;;  %s524_s1 = inlined_call_operand.vmem [shape: bf16[16,128], index: 1, kind: input, shape index: {}]   ;;  %s525_s2 = inlined_call_operand.vmem [shape: f32[1,128], index: 2, kind: input, shape index: {}]   ;;  %s526_s3 = inlined_call_operand.vmem [shape: bf16[128,64], index: 3, kind: input, shape index: {}]   ;;  %s527_s4 = inlined_call_operand.vmem [shape: f32[1,64], index: 4, kind: input, shape index: {}]   ;;  %s528_s5 = inlined_call_operand.vmem [shape: bf16[64,128], index: 5, kind: input, shape index: {}]   ;;  %s529_s6 = inlined_call_operand.vmem [shape: f32[1,128], index: 6, kind: input, shape index: {}]   ;;  %s530_s7 = inlined_call_operand.hbm [shape: f32[8,128], index: 7, kind: output, shape index: {}]  }
   0x1   :  { %v378_v0 = vld [vmem:[%s524_s1] sm:$0xff]   ;;  %337 = vmatprep.subr.bf16.mxu0 %v417_v1  ;;  %343 = vmatprep.subr.bf16.mxu1 %v417_v1  ;;  %v380_v4 = vld [vmem:[%s526_s3 + $0x8] sm:$0xff]   ;;  %v381_v5 = vld [vmem:[%s526_s3 + $0x10] sm:$0xff]  }
   0x2   :  { %v28_v2 = vld [vmem:[%s523_s0] sm:$0xf]  ;;  %338 = vmatpush3.bf16.msra.mxu0 %v378_v0  ;;  %339 = vmatprep.mubr.msk.bf16.mxu0 %vm418_vm0, %v417_v1  ;;  %v382_v6 = vld [vmem:[%s526_s3 + $0x18] sm:$0xff]  }
   0x3   :  { %v379_v3 = vld [vmem:[%s526_s3] sm:$0xff]   ;;  %359 = vmatprep.mubr.msk.bf16.mxu1 %vm418_vm0, %v417_v1  ;;  %363 = vmatprep.subr.bf16.mxu0 %v417_v1 }
   0x4   :  { %344 = vmatpush3.bf16.msra.mxu1 %v379_v3 }
   0x5   :  { %340 = vmatmul.mubr.msk.bf16.vlgmr.msra.gmra.mrb[0].mxu0 %vm44_vm1, %v28_v2  ;;  %345 = vmatprep.subr.bf16.mxu1 %v417_v1 }
   0x6   :  { %371 = vmatprep.mubr.msk.bf16.mxu0 %vm418_vm0, %v417_v1 }
   0x8   :  { %346 = vmatpush3.bf16.msra.mxu1 %v380_v4 }
   0x9   :  { %347 = vmatprep.subr.bf16.mxu1 %v417_v1 }
   0xc   :  { %348 = vmatpush3.bf16.msra.mxu1 %v381_v5 }
   0xd   :  { %12 = vsyncpa [#allocation3], 0  ;;  %349 = vmatprep.subr.bf16.mxu1 %v417_v1  ;;  %v383_v7 = vld [vmem:[%s526_s3 + $0x20] sm:$0xff]   ;;  %v384_v8 = vld [vmem:[%s526_s3 + $0x28] sm:$0xff]   ;;  %vm242_vm2 = vcmask 523264  }
   0xe   :  { %v385_v9 = vld [vmem:[%s526_s3 + $0x30] sm:$0xff]   ;;  %v386_v10 = vld [vmem:[%s526_s3 + $0x38] sm:$0xff]   ;;  %v387_v11 = vld [vmem:[%s528_s5] sm:$0xff]  }
   0xf   :  { %364 = vmatpush3.bf16.msra.mxu0 %v387_v11  ;;  %v388_v12 = vld [vmem:[%s528_s5 + $0x8] sm:$0xff]   ;;  %v303_v13 = vld [vmem:[%s525_s2] ss:$0 sm:$0xff]  ;;  %v389_v21 = vld [vmem:[%s528_s5 + $0x10] sm:$0xff]  }
  0x10   :  { %350 = vmatpush3.bf16.msra.mxu1 %v382_v6  ;;  %365 = vmatprep.subr.bf16.mxu0 %v417_v1  ;;  %v390_v22 = vld [vmem:[%s528_s5 + $0x18] sm:$0xff]   ;;  %v306_v23 = vld [vmem:[%s527_s4] ss:$0 sm:$0xff]  ;;  %s419_s4 = smov [#allocation2]  }
  0x11   :  { %351 = vmatprep.subr.bf16.mxu1 %v417_v1  ;;  %v315_v31 = vld [vmem:[%s529_s6] ss:$0 sm:$0xff]  ;;  %s295_s5 = sshll.u32 %s419_s4, 4  ;;  %s296_s5 = int_to_ptr.vmem [resolvable:$true] %s295_s5 }
  0x12   :  { %s393_s1 = scalar_lea.vmem %s296_s5, 128  ;;  %p398_p1 = scmp.lt.s32.totalorder %s296_s5, %s296_s5 }
  0x13   :  { %366 = vmatpush3.bf16.msra.mxu0 %v388_v12  ;;  %p394_p0 = scmp.ne.s32.totalorder %s296_s5, %s393_s1  ;;  %p399_p2 = scmp.lt.s32.totalorder %s393_s1, %s393_s1 }
  0x14   :  { %352 = vmatpush3.bf16.msra.mxu1 %v383_v7  ;;  %367 = vmatprep.subr.bf16.mxu0 %v417_v1 }
  0x15   :  { %353 = vmatprep.subr.bf16.mxu1 %v417_v1  ;;  %p400_p3 = por %p399_p2, %p398_p1 }
  0x17   :  { %368 = vmatpush3.bf16.msra.mxu0 %v389_v21  ;;  %p401_p4 = pnand %p400_p3, %p394_p0 }
  0x18   :  { %354 = vmatpush3.bf16.msra.mxu1 %v384_v8  ;;  %369 = vmatprep.subr.bf16.mxu0 %v417_v1 }
  0x19   :  { %355 = vmatprep.subr.bf16.mxu1 %v417_v1 }
  0x1b   :  { %370 = vmatpush3.bf16.msra.mxu0 %v390_v22 }
  0x1c   :  { %356 = vmatpush3.bf16.msra.mxu1 %v385_v9 }
  0x1d   :  { %357 = vmatprep.subr.bf16.mxu1 %v417_v1 }
  0x20   :  { %358 = vmatpush3.bf16.msra.mxu1 %v386_v10 }
  0xd8   :  { %v82_v14 = vpop.f32.mrb[0].mxu0 }
  0xd9   :  { %v83_v15 = vadd.f32 %v303_v13, %v82_v14  ;;  %v341_v16 = vpop.f32.mrb[1].mxu0 }
  0xda   :  { %v85_v17 = vpop.f32.mrb[2].mxu0 }
  0xdb   :  { %v88_v18 = vmax.f32 %v83_v15, 0.0  ;;  %v342_v19 = vpop.f32.mrb[3].mxu0 }
  0xdd   :  { %v89_v20 = vpack.c.bf16 %v88_v18, %v88_v18 }
  0xdf   :  { %360 = vmatmul.mubr.bf16.vlgmr.msra.gmra.mrb[0].mxu1 %v89_v20 }
 0x1b2   :  { %v195_v24 = vpop.f32.mrb[0].mxu1 }
 0x1b3   :  { %v196_v25 = vadd.f32 %v306_v23, %v195_v24  ;;  %v361_v26 = vpop.f32.mrb[1].mxu1 }
 0x1b4   :  { %v198_v27 = vpop.f32.mrb[2].mxu1 }
 0x1b5   :  { %v201_v28 = vmax.f32 %v196_v25, 0.0  ;;  %v362_v29 = vpop.f32.mrb[3].mxu1 }
 0x1b7   :  { %v202_v30 = vpack.c.bf16 %v201_v28, %v201_v28 }
 0x1b9   :  { %372 = vmatmul.mubr.msk.bf16.vlgmr.msra.gmra.mrb[4].mxu0 %vm242_vm2, %v202_v30 }
 0x28c   :  { %v280_v32 = vpop.f32.mrb[4].mxu0 }
 0x28d   :  { %v281_v33 = vadd.f32 %v315_v31, %v280_v32  ;;  %v373_v34 = vpop.f32.mrb[5].mxu0 }
 0x28e   :  { %v283_v35 = vpop.f32.mrb[6].mxu0 }
 0x28f   :  { %391 = vtanh.f32 %v281_v33  ;;  %v374_v36 = vpop.f32.mrb[7].mxu0 }
 0x299   :  { %v392_v37 = vpop.eup %391 }
 0x29a   :  { %v287_v38 = vmul.f32 2.0, %v392_v37 }
 0x29c   :  { %288 = vst [vmem:[#allocation2] sm:$0xff] %v287_v38 }
 0x29d   :  { %404 = shalt.err (!%p401_p4)
}
 0x29e   :  { %s405_s8 = scalar_lea.hbm %s530_s7, 128 }
 0x29f   :  { %p406_p5 = scmp.ne.s32.totalorder %s530_s7, %s405_s8  ;;  %p409_p6 = scmp.lt.u32.totalorder %s405_s8, %s530_s7 }
 0x2a1   :  { %p411_p7 = pnand %p409_p6, %p406_p5 }
 0x2a3   :  { %414 = shalt.err (!%p411_p7)
}
 0x2a4   :  { %298 = dma.vmem_to_hbm [thread:$0]  %s296_s5, 128, %s530_s7, [#allocation3]  }
 0x2a5   :  { %415 = dma.done.wait [#allocation3], 128  }
 0x2a6   :  { %416 = vsyncadd [#allocation3], 4294967168 }
 0x2a7   :  { %302 = vsyncpa [#allocation3], 1 }

</bundles_post_ra>
